<compile_context>
chip_gen: v7x
topology: tpu7x:2x2x1
jax: 0.10.0
libtpu: 0.0.40
codegen_flags: <defaults>
</compile_context>

<pallas_src>
import jax
import jax.numpy as jnp
from jax.experimental import pallas as pl
from jax.experimental.pallas import tpu as pltpu


_LANE = 128
_BLOCK_BYTES = 4 * 1024 * 1024  # target size of one (BB, TL) x/out block


def _add_pos_kernel(x_ref, pos_ref, o_ref):
    # Pure VPU elementwise add; pos (1, TL) broadcasts over the BB batch rows.
    o_ref[...] = (x_ref[...] + pos_ref[...]).astype(o_ref.dtype)


def _round_down(v: int, m: int) -> int:
    return (v // m) * m


def _pick_tiles(batch: int, lanes: int, elem_bytes: int,
                block_bytes: int = _BLOCK_BYTES):
    """Pick (rows_per_block, lane_tile) for a (batch, lanes) streaming add."""
    # Rows per block: full batch if small, otherwise a multiple of 8 (sublane rule).
    min_rows = batch if batch <= 8 else 8
    # Lane tile: as large as possible, a multiple of 128, within the block budget.
    max_tl = max(_LANE, _round_down(block_bytes // (elem_bytes * min_rows), _LANE))
    tl = lanes if lanes <= max_tl else max_tl
    # Rows per block: fill the remaining budget.
    bb = max(min_rows, block_bytes // (elem_bytes * tl))
    if bb >= batch:
        bb = batch
    elif bb > 8:
        bb = _round_down(bb, 8)
    return bb, tl


def no_patch_masking(x: jax.Array, pos_embed: jax.Array) -> jax.Array:
    """out = x + pos_embed, pos_embed broadcast over batch (axis 0)."""
    B, N, D = x.shape
    if pos_embed.ndim == 2:
        pos_embed = pos_embed[None]
    assert pos_embed.shape == (1, N, D), pos_embed.shape

    out_dtype = jnp.promote_types(x.dtype, pos_embed.dtype)
    Nd = N * D

    # Flatten (N, D) -> one lane axis (contiguous reshape, free) so the last
    # block dim is a big multiple of 128 -> lane-dense stores even for D < 128.
    x2 = x.reshape(B, Nd)
    pos2 = pos_embed.reshape(1, Nd)

    elem_bytes = max(x.dtype.itemsize, pos_embed.dtype.itemsize,
                     jnp.dtype(out_dtype).itemsize)
    bb, tl = _pick_tiles(B, Nd, elem_bytes)

    # Lane-tile axis OUTER, batch INNER: pos's block index only depends on the
    # lane axis, so the pos tile stays resident across the batch sweep.
    grid = (pl.cdiv(Nd, tl), pl.cdiv(B, bb))

    # In-place add into x's buffer when dtypes match (saves an HBM output alloc).
    io_aliases = {0: 0} if jnp.dtype(out_dtype) == x.dtype else {}

    bytes_accessed = (x2.size * x.dtype.itemsize
                      + pos2.size * pos_embed.dtype.itemsize
                      + x2.size * jnp.dtype(out_dtype).itemsize)

    out2 = pl.pallas_call(
        _add_pos_kernel,
        out_shape=jax.ShapeDtypeStruct((B, Nd), out_dtype),
        grid_spec=pltpu.PrefetchScalarGridSpec(
            num_scalar_prefetch=0,
            grid=grid,
            in_specs=[
                # x: one (bb, tl) tile per grid step
                pl.BlockSpec((bb, tl), lambda l, b: (b, l)),
                # pos_embed: same block across the inner batch axis -> VMEM-resident
                pl.BlockSpec((1, tl), lambda l, b: (0, l)),
            ],
            out_specs=pl.BlockSpec((bb, tl), lambda l, b: (b, l)),
        ),
        compiler_params=pltpu.CompilerParams(
            dimension_semantics=("parallel", "parallel"),
            vmem_limit_bytes=32 * 1024 * 1024,
        ),
        cost_estimate=pl.CostEstimate(
            flops=B * Nd, transcendentals=0, bytes_accessed=bytes_accessed),
        input_output_aliases=io_aliases,
    )(x2, pos2)

    return out2.reshape(B, N, D)


if __name__ == "__main__":
    key = jax.random.PRNGKey(0)
    kx, kp = jax.random.split(key)

    B, N, D = 2, 8, 32  # batch, seq (num patches [+cls]), hidden
    x = jax.random.normal(kx, (B, N, D), dtype=jnp.float32)
    # pos_embed is supplied by the caller in the reference forward (module has
    # no parameters of its own); deterministic init here.
    pos_embed = 0.02 * jax.random.normal(kp, (1, N, D), dtype=jnp.float32)

    # Reference computed before the (aliasing) kernel call.
    ref = x + pos_embed
    out = jax.block_until_ready(no_patch_masking(x, pos_embed))
    assert out.shape == (B, N, D) and out.dtype == ref.dtype
    assert jnp.allclose(out, ref), "mismatch vs reference (f32)"

    # Mixed-dtype path (bf16 activations + f32 learned pos_embed -> f32 out).
    x_bf16 = x.astype(jnp.bfloat16)
    ref2 = x_bf16 + pos_embed
    out2 = jax.block_until_ready(no_patch_masking(x_bf16, pos_embed))
    assert out2.dtype == ref2.dtype
    assert jnp.allclose(out2, ref2), "mismatch vs reference (bf16 + f32)"

    print("KERNEL_OK")
</pallas_src>

<mosaic_0001>
module attributes {stable_mosaic.version = 11 : i64} {
  func.func @_add_pos_kernel(%arg0: i32, %arg1: i32, %arg2: memref<2x256xf32, #tpu.memory_space<vmem>>, %arg3: memref<1x256xf32, #tpu.memory_space<vmem>>, %arg4: memref<2x256xf32, #tpu.memory_space<vmem>>) attributes {dimension_semantics = [#tpu.dimension_semantics<parallel>, #tpu.dimension_semantics<parallel>], iteration_bounds = array<i64: 1, 1>, scalar_prefetch = 0 : i64, scratch_operands = 0 : i64, tpu.core_type = #tpu.core_type<tc>, window_params = [{transform_indices = @transform_0, window_bounds = array<i64: 2, 256>}, {transform_indices = @transform_1, window_bounds = array<i64: 1, 256>}, {transform_indices = @transform_2, window_bounds = array<i64: 2, 256>}]} {
    %c0 = arith.constant 0 : index
    %c0_0 = arith.constant 0 : index
    %0 = vector.load %arg2[%c0, %c0_0] : memref<2x256xf32, #tpu.memory_space<vmem>>, vector<2x256xf32>
    %c0_1 = arith.constant 0 : index
    %c0_2 = arith.constant 0 : index
    %1 = vector.load %arg3[%c0_1, %c0_2] : memref<1x256xf32, #tpu.memory_space<vmem>>, vector<1x256xf32>
    %2 = vector.broadcast %1 : vector<1x256xf32> to vector<2x256xf32>
    %3 = arith.addf %0, %2 : vector<2x256xf32>
    %c0_3 = arith.constant 0 : index
    %c0_4 = arith.constant 0 : index
    %4 = vector.load %arg4[%c0_3, %c0_4] : memref<2x256xf32, #tpu.memory_space<vmem>>, vector<2x256xf32>
    tpu.vector_store %arg4[%c0_3, %c0_4], %3 {strides = array<i32>} : memref<2x256xf32, #tpu.memory_space<vmem>>, vector<2x256xf32>,
    return
  }
  func.func @transform_0(%arg0: i32, %arg1: i32) -> (i32, i32) {
    %c0_i32 = arith.constant 0 : i32
    return %arg1, %arg0 : i32, i32
  }
  func.func @transform_1(%arg0: i32, %arg1: i32) -> (i32, i32) {
    %c0_i32 = arith.constant 0 : i32
    %c0_i32_0 = arith.constant 0 : i32
    return %c0_i32, %arg0 : i32, i32
  }
  func.func @transform_2(%arg0: i32, %arg1: i32) -> (i32, i32) {
    %c0_i32 = arith.constant 0 : i32
    return %arg1, %arg0 : i32, i32
  }
}

</mosaic_0001>

<bundles_post_ra>
// kernel: tpu_custom_call.1
= control target key start
LH: loop header
LB: loop body
LE: loop exit
PB: predicated region body
PF: predicated region fallthrough
CT: control target
= control target key end

     0   :  { %7 = vsyncpa [#allocation3], 0  ;;  %s157_s0 = inlined_call_operand.hbm [shape: f32[2,256], index: 0, kind: input, shape index: {}, may-alias: {0,2}]   ;;  %s158_s1 = inlined_call_operand.vmem [shape: f32[1,256], index: 1, kind: input, shape index: {}]   ;;  %s159_s2 = inlined_call_operand.hbm [shape: f32[2,256], index: 2, kind: output, shape index: {}, may-alias: {0,2}]  }
   0x1   :  { %8 = vsyncpa [#allocation4], 0  ;;  %s112_s9 = smov [#allocation2]   ;;  %s64_s13 = scalar_lea.hbm %s157_s0, 64 }
   0x2   :  { %s15_s10 = sshll.u32 %s112_s9, 4  ;;  %p65_p0 = scmp.ne.s32.totalorder %s157_s0, %s64_s13  ;;  %s16_s10 = int_to_ptr.vmem [resolvable:$true] %s15_s10 }
   0x3   :  { %p68_p1 = scmp.lt.u32.totalorder %s64_s13, %s157_s0 }
   0x5   :  { %p70_p2 = pnand %p68_p1, %p65_p0 }
   0x7   :  { %73 = shalt.err (!%p70_p2)
}
   0x8   :  { %s74_s18 = scalar_lea.vmem %s16_s10, 64  ;;  %p79_p4 = scmp.lt.s32.totalorder %s16_s10, %s16_s10 }
   0x9   :  { %p75_p3 = scmp.ne.s32.totalorder %s16_s10, %s74_s18  ;;  %p80_p5 = scmp.lt.s32.totalorder %s74_s18, %s74_s18 }
   0xb   :  { %p81_p6 = por %p80_p5, %p79_p4 }
   0xd   :  { %p82_p7 = pnand %p81_p6, %p75_p3 }
   0xf   :  { %85 = shalt.err (!%p82_p7)
}
  0x10   :  { %18 = dma.hbm_to_vmem [thread:$0]  %s157_s0, 64, %s16_s10, [#allocation3]  }
  0x11   :  { %108 = dma.done.wait [#allocation3], 64  }
  0x12   :  { %109 = vsyncadd [#allocation3], 4294967232  ;;  %v27_v0 = vlaneseq  ;;  %v113_v1 = vmov 1983009808   ;;  %v25_v7 = vld [vmem:[%s158_s1] sm:$0x3] }
  0x13   :  { %v37_v2 = vunpack.c.l.s4 %v113_v1  ;;  %v24_v12 = vld [vmem:[#allocation2] sm:$0xf]  ;;  %s114_s23 = smov [#allocation5]  }
  0x14   :  { %v28_v3 = vshrl.u32 %v27_v0, 7  ;;  %s52_s0 = sshll.u32 %s114_s23, 4  ;;  %s53_s0 = int_to_ptr.vmem [resolvable:$true] %s52_s0 }
  0x15   :  { %v38_v6 = vunpack.c.0.s8 %v37_v2  ;;  %s86_s24 = scalar_lea.vmem %s53_s0, 64  ;;  %p91_p9 = scmp.lt.s32.totalorder %s53_s0, %s53_s0 }
  0x16   :  { %v29_v4 = vsub.s32 0, %v28_v3  ;;  %v33_v5 = vsub.s32 1, %v28_v3  ;;  %p87_p8 = scmp.ne.s32.totalorder %s53_s0, %s86_s24  ;;  %p92_p10 = scmp.lt.s32.totalorder %s86_s24, %s86_s24 }
  0x17   :  { %v41_v10 = vsub.s32 %v38_v6, %v28_v3 }
  0x18   :  { %v30_v8 = vrot.slane %v25_v7, %v29_v4  ;;  %v34_v9 = vrot.slane %v25_v7, %v33_v5  ;;  %p93_p11 = por %p92_p10, %p91_p9 }
  0x1a   :  { %v35_v11 = vcombine.low %v30_v8, %v34_v9  ;;  %p94_p12 = pnand %p93_p11, %p87_p8 }
  0x1c   :  { %v42_v13 = vrot.slane %v35_v11, %v41_v10 }
  0x1e   :  { %v44_v14 = vadd.f32 %v42_v13, %v24_v12 }
  0x20   :  { %45 = vst [vmem:[#allocation5] sm:$0xf] %v44_v14 }
  0x21   :  { %97 = shalt.err (!%p94_p12)
}
  0x22   :  { %s98_s26 = scalar_lea.hbm %s159_s2, 64 }
  0x23   :  { %p99_p13 = scmp.ne.s32.totalorder %s159_s2, %s98_s26  ;;  %p102_p0 = scmp.lt.u32.totalorder %s98_s26, %s159_s2 }
  0x25   :  { %p104_p1 = pnand %p102_p0, %p99_p13 }
  0x27   :  { %107 = shalt.err (!%p104_p1)
}
  0x28   :  { %55 = dma.vmem_to_hbm [thread:$0]  %s53_s0, 64, %s159_s2, [#allocation4]  }
  0x29   :  { %110 = dma.done.wait [#allocation4], 64  }
  0x2a   :  { %111 = vsyncadd [#allocation4], 4294967232 }
  0x2b   :  { %59 = vsyncpa [#allocation3], 1 }
  0x2c   :  { %60 = vsyncpa [#allocation4], 1 }

</bundles_post_ra>
